<compile_context>
chip_gen: v7x
topology: tpu7x:2x2x1
jax: 0.10.0
libtpu: 0.0.40
codegen_flags: <defaults>
</compile_context>

<pallas_src>
import functools

import jax
import jax.numpy as jnp
from jax.experimental import pallas as pl
from jax.experimental.pallas import tpu as pltpu


OUT_LANES = 8  # packed output width: col0=logprob, col1=value, col2=entropy


def actor_critic_kernel(
    state_ref, action_ref,
    w1_ref, b1_ref, w2_ref, b2_ref, wh_ref, bh_ref,
    out_ref,
):
    x = state_ref[...]                                              # [Bt, D]

    # ---- fused body: 2 matmuls cover both actor and critic stacks ----
    h = jnp.tanh(
        jnp.dot(x, w1_ref[...], preferred_element_type=jnp.float32) + b1_ref[...]
    )                                                               # [Bt, 2H]
    h = jnp.tanh(
        jnp.dot(h, w2_ref[...], preferred_element_type=jnp.float32) + b2_ref[...]
    )                                                               # [Bt, 2H]

    # ---- fused heads: actor logits (cols 0..A-1) + critic value (col A) ----
    head = (
        jnp.dot(h, wh_ref[...], preferred_element_type=jnp.float32) + bh_ref[...]
    )                                                               # [Bt, A+1]
    A = wh_ref.shape[1] - 1
    logits = head[:, :A]                                            # [Bt, A]
    value = head[:, A:A + 1]                                        # [Bt, 1]

    # ---- softmax / Categorical statistics (single exp pass over [Bt, A]) ----
    m = jnp.max(logits, axis=-1, keepdims=True)
    z = logits - m
    exp_z = jnp.exp(z)                                              # only exp over [Bt,A]
    denom = jnp.sum(exp_z, axis=-1, keepdims=True)                  # [Bt, 1]
    logp = z - jnp.log(denom)                                       # log softmax
    # exact reciprocal of a [Bt,1] tensor is cheap; keeps entropy at f32 accuracy
    probs = exp_z * pl.reciprocal(denom)                            # softmax, no 2nd exp

    # Categorical.log_prob(action): in-kernel one-hot via iota compare
    act = action_ref[...]                                           # [Bt, 1] int32
    col = jax.lax.broadcasted_iota(jnp.int32, logp.shape, 1)
    onehot = col == act
    logprob = jnp.sum(jnp.where(onehot, logp, 0.0), axis=-1, keepdims=True)
    # Categorical.entropy()
    entropy = -jnp.sum(probs * logp, axis=-1, keepdims=True)

    # ---- single packed store (8 lanes): col0=logprob, col1=value, col2=entropy ----
    ocol = jax.lax.broadcasted_iota(jnp.int32, out_ref.shape, 1)
    out_ref[...] = jnp.where(
        ocol == 0, logprob,
        jnp.where(ocol == 1, value,
                  jnp.where(ocol == 2, entropy, 0.0)))


def fuse_params(p):
    """One-time fusion of the 6 Linear layers into 3 block-structured matmuls."""
    H = p["w2a"].shape[0]
    A = p["wpa"].shape[1]
    zhh = jnp.zeros((H, H), jnp.float32)
    fused = {
        "w1": jnp.concatenate([p["w1a"], p["w1c"]], axis=1),        # [D, 2H]
        "b1": jnp.concatenate([p["b1a"], p["b1c"]], axis=1),        # [1, 2H]
        "w2": jnp.block([[p["w2a"], zhh], [zhh, p["w2c"]]]),        # [2H, 2H]
        "b2": jnp.concatenate([p["b2a"], p["b2c"]], axis=1),        # [1, 2H]
        "wh": jnp.block([[p["wpa"], jnp.zeros((H, 1), jnp.float32)],
                         [jnp.zeros((H, A), jnp.float32), p["wvc"]]]),  # [2H, A+1]
        "bh": jnp.concatenate([p["bpa"], p["bvc"]], axis=1),        # [1, A+1]
    }
    return fused


def _round_up(x, m):
    return (x + m - 1) // m * m


def _choose_bt(B, block_b):
    """Batch tile: multiple of 8, <= block_b, and >=2 grid steps when B allows
    (v7x has 2 TensorCores; the parallel grid axis is how they get work)."""
    bt = _round_up(min(block_b, B), 8)
    if B >= 16:
        bt = min(bt, _round_up(pl.cdiv(B, 2), 8))
    return max(8, bt)


@functools.partial(jax.jit, static_argnames=("block_b",))
def actor_critic_evaluate(state, action, fused, *, block_b=4096):
    """Returns (logprobs [B], value [B], entropy [B]) — the .evaluate() outputs."""
    B, D = state.shape

    Bt = _choose_bt(B, block_b)
    grid = (pl.cdiv(B, Bt),)            # ragged last block handled by Pallas; no host pad
    action2d = action.astype(jnp.int32).reshape(B, 1)

    def resident(arr):
        # full-array block, constant index -> DMA'd once, stays resident in VMEM
        return pl.BlockSpec(arr.shape, lambda i: (0, 0))

    out = pl.pallas_call(
        actor_critic_kernel,
        out_shape=jax.ShapeDtypeStruct((B, OUT_LANES), jnp.float32),
        grid_spec=pltpu.PrefetchScalarGridSpec(
            num_scalar_prefetch=0,
            grid=grid,
            in_specs=[
                pl.BlockSpec((Bt, D), lambda i: (i, 0)),      # state
                pl.BlockSpec((Bt, 1), lambda i: (i, 0)),      # action (int32)
                resident(fused["w1"]), resident(fused["b1"]),
                resident(fused["w2"]), resident(fused["b2"]),
                resident(fused["wh"]), resident(fused["bh"]),
            ],
            out_specs=pl.BlockSpec((Bt, OUT_LANES), lambda i: (i, 0)),
        ),
        compiler_params=pltpu.CompilerParams(
            dimension_semantics=("parallel",),
            vmem_limit_bytes=32 * 1024 * 1024,
        ),
    )(state, action2d,
      fused["w1"], fused["b1"], fused["w2"], fused["b2"],
      fused["wh"], fused["bh"])

    # torch.squeeze(value) semantics; unpack the packed slab
    return out[:B, 0], out[:B, 1], out[:B, 2]


def init_params(key, obs_dim, hidden, n_actions):
    """Deterministic synthetic parameters (shapes match the implied nn.Linear stack)."""
    keys = jax.random.split(key, 10)

    def lin(k, fan_in, fan_out):
        bound = 1.0 / jnp.sqrt(fan_in)
        kw, kb = jax.random.split(k)
        w = jax.random.uniform(kw, (fan_in, fan_out), jnp.float32, -bound, bound)
        b = jax.random.uniform(kb, (1, fan_out), jnp.float32, -bound, bound)
        return w, b

    p = {}
    p["w1a"], p["b1a"] = lin(keys[0], obs_dim, hidden)
    p["w2a"], p["b2a"] = lin(keys[1], hidden, hidden)
    p["wpa"], p["bpa"] = lin(keys[2], hidden, n_actions)
    p["w1c"], p["b1c"] = lin(keys[3], obs_dim, hidden)
    p["w2c"], p["b2c"] = lin(keys[4], hidden, hidden)
    p["wvc"], p["bvc"] = lin(keys[5], hidden, 1)
    return p


if __name__ == "__main__":
    B, OBS_DIM, HIDDEN, N_ACTIONS = 64, 16, 32, 8

    key = jax.random.PRNGKey(0)
    k_state, k_action, k_params = jax.random.split(key, 3)

    state = jax.random.normal(k_state, (B, OBS_DIM), jnp.float32)
    action = jax.random.randint(k_action, (B,), 0, N_ACTIONS)
    params = init_params(k_params, OBS_DIM, HIDDEN, N_ACTIONS)
    fused = fuse_params(params)

    # default block_b: the >=2-grid-step cap gives Bt=32, grid=(2,) for B=64
    logprobs, value, entropy = actor_critic_evaluate(state, action, fused)
    jax.block_until_ready((logprobs, value, entropy))

    # lightweight sanity check against a pure-JAX reference (unfused params)
    def ref(state, action, p):
        ha = jnp.tanh(state @ p["w1a"] + p["b1a"])
        ha = jnp.tanh(ha @ p["w2a"] + p["b2a"])
        logits = ha @ p["wpa"] + p["bpa"]
        logp = jax.nn.log_softmax(logits, axis=-1)
        probs = jax.nn.softmax(logits, axis=-1)
        lp = jnp.take_along_axis(logp, action[:, None], axis=-1)[:, 0]
        ent = -jnp.sum(probs * logp, axis=-1)
        hc = jnp.tanh(state @ p["w1c"] + p["b1c"])
        hc = jnp.tanh(hc @ p["w2c"] + p["b2c"])
        val = jnp.squeeze(hc @ p["wvc"] + p["bvc"])
        return lp, val, ent

    lp_r, v_r, e_r = ref(state, action, params)
    assert jnp.allclose(logprobs, lp_r, atol=1e-5), (logprobs, lp_r)
    assert jnp.allclose(value, v_r, atol=1e-5), (value, v_r)
    assert jnp.allclose(entropy, e_r, atol=1e-5), (entropy, e_r)

    print("KERNEL_OK")
</pallas_src>

<mosaic_0001>
module attributes {stable_mosaic.version = 11 : i64} {
  func.func @actor_critic_kernel(%arg0: i32, %arg1: memref<32x16xf32, #tpu.memory_space<vmem>>, %arg2: memref<32x1xi32, #tpu.memory_space<vmem>>, %arg3: memref<16x64xf32, #tpu.memory_space<vmem>>, %arg4: memref<1x64xf32, #tpu.memory_space<vmem>>, %arg5: memref<64x64xf32, #tpu.memory_space<vmem>>, %arg6: memref<1x64xf32, #tpu.memory_space<vmem>>, %arg7: memref<64x9xf32, #tpu.memory_space<vmem>>, %arg8: memref<1x9xf32, #tpu.memory_space<vmem>>, %arg9: memref<32x8xf32, #tpu.memory_space<vmem>>) attributes {dimension_semantics = [#tpu.dimension_semantics<parallel>], iteration_bounds = array<i64: 2>, scalar_prefetch = 0 : i64, scratch_operands = 0 : i64, tpu.core_type = #tpu.core_type<tc>, window_params = [{transform_indices = @transform_0, window_bounds = array<i64: 32, 16>}, {transform_indices = @transform_1, window_bounds = array<i64: 32, 1>}, {pipeline_mode = #tpu.pipeline_mode<synchronous>, transform_indices = @transform_2, window_bounds = array<i64: 16, 64>}, {pipeline_mode = #tpu.pipeline_mode<synchronous>, transform_indices = @transform_3, window_bounds = array<i64: 1, 64>}, {pipeline_mode = #tpu.pipeline_mode<synchronous>, transform_indices = @transform_4, window_bounds = array<i64: 64, 64>}, {pipeline_mode = #tpu.pipeline_mode<synchronous>, transform_indices = @transform_5, window_bounds = array<i64: 1, 64>}, {pipeline_mode = #tpu.pipeline_mode<synchronous>, transform_indices = @transform_6, window_bounds = array<i64: 64, 9>}, {pipeline_mode = #tpu.pipeline_mode<synchronous>, transform_indices = @transform_7, window_bounds = array<i64: 1, 9>}, {transform_indices = @transform_8, window_bounds = array<i64: 32, 8>}]} {
    %c0 = arith.constant 0 : index
    %c0_0 = arith.constant 0 : index
    %0 = vector.load %arg1[%c0, %c0_0] : memref<32x16xf32, #tpu.memory_space<vmem>>, vector<32x16xf32>
    %c0_1 = arith.constant 0 : index
    %c0_2 = arith.constant 0 : index
    %1 = vector.load %arg3[%c0_1, %c0_2] : memref<16x64xf32, #tpu.memory_space<vmem>>, vector<16x64xf32>
    %cst = arith.constant dense<0.000000e+00> : vector<32x64xf32>
    %2 = tpu.matmul %0, %1, %cst {dimension_numbers = #tpu.dot_dimension_numbers<[1], [0], [0], [1], [0, 0, 1, 1], [], []>} : vector<32x16xf32>, vector<16x64xf32>, vector<32x64xf32> -> vector<32x64xf32>
    %c0_3 = arith.constant 0 : index
    %c0_4 = arith.constant 0 : index
    %3 = vector.load %arg4[%c0_3, %c0_4] : memref<1x64xf32, #tpu.memory_space<vmem>>, vector<1x64xf32>
    %4 = vector.broadcast %3 : vector<1x64xf32> to vector<32x64xf32>
    %5 = arith.addf %2, %4 : vector<32x64xf32>
    %6 = math.tanh %5 : vector<32x64xf32>
    %c0_5 = arith.constant 0 : index
    %c0_6 = arith.constant 0 : index
    %7 = vector.load %arg5[%c0_5, %c0_6] : memref<64x64xf32, #tpu.memory_space<vmem>>, vector<64x64xf32>
    %cst_7 = arith.constant dense<0.000000e+00> : vector<32x64xf32>
    %8 = tpu.matmul %6, %7, %cst_7 {dimension_numbers = #tpu.dot_dimension_numbers<[1], [0], [0], [1], [0, 0, 1, 1], [], []>} : vector<32x64xf32>, vector<64x64xf32>, vector<32x64xf32> -> vector<32x64xf32>
    %c0_8 = arith.constant 0 : index
    %c0_9 = arith.constant 0 : index
    %9 = vector.load %arg6[%c0_8, %c0_9] : memref<1x64xf32, #tpu.memory_space<vmem>>, vector<1x64xf32>
    %10 = vector.broadcast %9 : vector<1x64xf32> to vector<32x64xf32>
    %11 = arith.addf %8, %10 : vector<32x64xf32>
    %12 = math.tanh %11 : vector<32x64xf32>
    %c0_10 = arith.constant 0 : index
    %c0_11 = arith.constant 0 : index
    %13 = vector.load %arg7[%c0_10, %c0_11] : memref<64x9xf32, #tpu.memory_space<vmem>>, vector<64x9xf32>
    %cst_12 = arith.constant dense<0.000000e+00> : vector<32x9xf32>
    %14 = tpu.matmul %12, %13, %cst_12 {dimension_numbers = #tpu.dot_dimension_numbers<[1], [0], [0], [1], [0, 0, 1, 1], [], []>} : vector<32x64xf32>, vector<64x9xf32>, vector<32x9xf32> -> vector<32x9xf32>
    %c0_13 = arith.constant 0 : index
    %c0_14 = arith.constant 0 : index
    %15 = vector.load %arg8[%c0_13, %c0_14] : memref<1x9xf32, #tpu.memory_space<vmem>>, vector<1x9xf32>
    %16 = vector.broadcast %15 : vector<1x9xf32> to vector<32x9xf32>
    %17 = arith.addf %14, %16 : vector<32x9xf32>
    %18 = vector.extract_strided_slice %17 {offsets = [0, 0], sizes = [32, 8], strides = [1, 1]} : vector<32x9xf32> to vector<32x8xf32>
    %19 = vector.extract_strided_slice %17 {offsets = [0, 8], sizes = [32, 1], strides = [1, 1]} : vector<32x9xf32> to vector<32x1xf32>
    %cst_15 = arith.constant dense<0xFF800000> : vector<32xf32>
    %20 = vector.multi_reduction <maximumf>, %18, %cst_15 [1] : vector<32x8xf32> to vector<32xf32>
    %21 = vector.shape_cast %20 : vector<32xf32> to vector<32x1xf32>
    %22 = vector.broadcast %21 : vector<32x1xf32> to vector<32x8xf32>
    %23 = arith.subf %18, %22 : vector<32x8xf32>
    %24 = math.exp %23 : vector<32x8xf32>
    %cst_16 = arith.constant dense<0.000000e+00> : vector<32xf32>
    %25 = vector.multi_reduction <add>, %24, %cst_16 [1] : vector<32x8xf32> to vector<32xf32>
    %26 = vector.shape_cast %25 : vector<32xf32> to vector<32x1xf32>
    %27 = math.log %26 : vector<32x1xf32>
    %28 = vector.broadcast %27 : vector<32x1xf32> to vector<32x8xf32>
    %29 = arith.subf %23, %28 : vector<32x8xf32>
    %30 = tpu.reciprocal %26 : vector<32x1xf32> -> vector<32x1xf32>
    %31 = vector.broadcast %30 : vector<32x1xf32> to vector<32x8xf32>
    %32 = arith.mulf %24, %31 : vector<32x8xf32>
    %c0_17 = arith.constant 0 : index
    %c0_18 = arith.constant 0 : index
    %33 = vector.load %arg2[%c0_17, %c0_18] : memref<32x1xi32, #tpu.memory_space<vmem>>, vector<32x1xi32>
    %34 = tpu.iota {dimensions = array<i32: 1>} : vector<32x8xi32>
    %35 = vector.broadcast %33 : vector<32x1xi32> to vector<32x8xi32>
    %36 = arith.cmpi eq, %34, %35 : vector<32x8xi32>
    %cst_19 = arith.constant 0.000000e+00 : f32
    %37 = vector.broadcast %cst_19 : f32 to vector<32x8xf32>
    %38 = arith.select %36, %29, %37 : vector<32x8xi1>, vector<32x8xf32>
    %cst_20 = arith.constant dense<0.000000e+00> : vector<32xf32>
    %39 = vector.multi_reduction <add>, %38, %cst_20 [1] : vector<32x8xf32> to vector<32xf32>
    %40 = vector.shape_cast %39 : vector<32xf32> to vector<32x1xf32>
    %41 = arith.mulf %32, %29 : vector<32x8xf32>
    %cst_21 = arith.constant dense<0.000000e+00> : vector<32xf32>
    %42 = vector.multi_reduction <add>, %41, %cst_21 [1] : vector<32x8xf32> to vector<32xf32>
    %43 = vector.shape_cast %42 : vector<32xf32> to vector<32x1xf32>
    %cst_22 = arith.constant 0.000000e+00 : f32
    %44 = vector.broadcast %cst_22 : f32 to vector<32x1xf32>
    %45 = arith.subf %44, %43 : vector<32x1xf32>
    %46 = tpu.iota {dimensions = array<i32: 1>} : vector<32x8xi32>
    %c0_i32 = arith.constant 0 : i32
    %47 = vector.broadcast %c0_i32 : i32 to vector<32x8xi32>
    %48 = arith.cmpi eq, %46, %47 : vector<32x8xi32>
    %c1_i32 = arith.constant 1 : i32
    %49 = vector.broadcast %c1_i32 : i32 to vector<32x8xi32>
    %50 = arith.cmpi eq, %46, %49 : vector<32x8xi32>
    %c2_i32 = arith.constant 2 : i32
    %51 = vector.broadcast %c2_i32 : i32 to vector<32x8xi32>
    %52 = arith.cmpi eq, %46, %51 : vector<32x8xi32>
    %cst_23 = arith.constant 0.000000e+00 : f32
    %53 = vector.shape_cast %45 : vector<32x1xf32> to vector<32x1xf32>
    %54 = vector.broadcast %53 : vector<32x1xf32> to vector<32x8xf32>
    %55 = vector.broadcast %cst_23 : f32 to vector<32x8xf32>
    %56 = arith.select %52, %54, %55 : vector<32x8xi1>, vector<32x8xf32>
    %57 = vector.shape_cast %19 : vector<32x1xf32> to vector<32x1xf32>
    %58 = vector.broadcast %57 : vector<32x1xf32> to vector<32x8xf32>
    %59 = arith.select %50, %58, %56 : vector<32x8xi1>, vector<32x8xf32>
    %60 = vector.shape_cast %40 : vector<32x1xf32> to vector<32x1xf32>
    %61 = vector.broadcast %60 : vector<32x1xf32> to vector<32x8xf32>
    %62 = arith.select %48, %61, %59 : vector<32x8xi1>, vector<32x8xf32>
    %c0_24 = arith.constant 0 : index
    %c0_25 = arith.constant 0 : index
    %63 = vector.load %arg9[%c0_24, %c0_25] : memref<32x8xf32, #tpu.memory_space<vmem>>, vector<32x8xf32>
    tpu.vector_store %arg9[%c0_24, %c0_25], %62 {strides = array<i32>} : memref<32x8xf32, #tpu.memory_space<vmem>>, vector<32x8xf32>,
    return
  }
  func.func @transform_0(%arg0: i32) -> (i32, i32) {
    %c0_i32 = arith.constant 0 : i32
    %c0_i32_0 = arith.constant 0 : i32
    return %arg0, %c0_i32 : i32, i32
  }
  func.func @transform_1(%arg0: i32) -> (i32, i32) {
    %c0_i32 = arith.constant 0 : i32
    %c0_i32_0 = arith.constant 0 : i32
    return %arg0, %c0_i32 : i32, i32
  }
  func.func @transform_2(%arg0: i32) -> (i32, i32) {
    %c0_i32 = arith.constant 0 : i32
    %c0_i32_0 = arith.constant 0 : i32
    %c0_i32_1 = arith.constant 0 : i32
    return %c0_i32, %c0_i32_0 : i32, i32
  }
  func.func @transform_3(%arg0: i32) -> (i32, i32) {
    %c0_i32 = arith.constant 0 : i32
    %c0_i32_0 = arith.constant 0 : i32
    %c0_i32_1 = arith.constant 0 : i32
    return %c0_i32, %c0_i32_0 : i32, i32
  }
  func.func @transform_4(%arg0: i32) -> (i32, i32) {
    %c0_i32 = arith.constant 0 : i32
    %c0_i32_0 = arith.constant 0 : i32
    %c0_i32_1 = arith.constant 0 : i32
    return %c0_i32, %c0_i32_0 : i32, i32
  }
  func.func @transform_5(%arg0: i32) -> (i32, i32) {
    %c0_i32 = arith.constant 0 : i32
    %c0_i32_0 = arith.constant 0 : i32
    %c0_i32_1 = arith.constant 0 : i32
    return %c0_i32, %c0_i32_0 : i32, i32
  }
  func.func @transform_6(%arg0: i32) -> (i32, i32) {
    %c0_i32 = arith.constant 0 : i32
    %c0_i32_0 = arith.constant 0 : i32
    %c0_i32_1 = arith.constant 0 : i32
    return %c0_i32, %c0_i32_0 : i32, i32
  }
  func.func @transform_7(%arg0: i32) -> (i32, i32) {
    %c0_i32 = arith.constant 0 : i32
    %c0_i32_0 = arith.constant 0 : i32
    %c0_i32_1 = arith.constant 0 : i32
    return %c0_i32, %c0_i32_0 : i32, i32
  }
  func.func @transform_8(%arg0: i32) -> (i32, i32) {
    %c0_i32 = arith.constant 0 : i32
    %c0_i32_0 = arith.constant 0 : i32
    return %arg0, %c0_i32 : i32, i32
  }
}

</mosaic_0001>

<bundles_post_ra>
// kernel: actor_critic_evaluate.1
= control target key start
LH: loop header
LB: loop body
LE: loop exit
PB: predicated region body
PF: predicated region fallthrough
CT: control target
= control target key end

     0   :  { %s1154_s27 = smov 0   ;;  %s1339_s0 = inlined_call_operand.vmem [shape: f32[64,16], index: 0, kind: input, shape index: {}]   ;;  %s1340_s1 = inlined_call_operand.vmem [shape: s32[64,1], index: 1, kind: input, shape index: {}]   ;;  %s1341_s2 = inlined_call_operand.vmem [shape: f32[16,64], index: 2, kind: input, shape index: {}]   ;;  %s1342_s3 = inlined_call_operand.vmem [shape: f32[1,64], index: 3, kind: input, shape index: {}]   ;;  %s1343_s4 = inlined_call_operand.vmem [shape: f32[64,64], index: 4, kind: input, shape index: {}]   ;;  %s1344_s5 = inlined_call_operand.vmem [shape: f32[1,64], index: 5, kind: input, shape index: {}]   ;;  %s1345_s6 = inlined_call_operand.vmem [shape: f32[64,9], index: 6, kind: input, shape index: {}]   ;;  %s1346_s7 = inlined_call_operand.vmem [shape: f32[1,9], index: 7, kind: input, shape index: {}]   ;;  %s1347_s8 = inlined_call_operand.vmem [shape: f32[64,8], index: 8, kind: output, shape index: {}]  }
   0x1 LB: > { %s897_s28 = sadd.s32 4294967295, %s1105_s27   ;;  %p901_p0 = scmp.ge.s32.totalorder %s1105_s27, 1  ;;  %s1105_s27 = sphi %s1154_s27, %s18_s27  }
   0x2   : > { %p274_p1 = scmp.lt.s32.totalorder %s1105_s27, 3 }
   0x4   : > { %p275_p2 = pnand %p901_p0, %p274_p1 }
   0x5   : > { %v335_v0 = vld [vmem:[%s1341_s2] sm:$0xff] (!%p275_p2)  ;;  %v336_v1 = vld [vmem:[%s1341_s2 + $0x8] sm:$0xff] (!%p275_p2)  ;;  %s902_s11 = sshll.u32 (!%p275_p2), %s897_s28, 2  ;;  %vm344_vm0 = vcmask (!%p275_p2), 130048   ;;  %v448_v10 = vld [vmem:[%s1343_s4 + $0x10] sm:$0xff] (!%p275_p2)  ;;  %vm461_vm1 = vcmask (!%p275_p2), 523264  }
   0x6   : > { %278 = sbr.rel (%p275_p2) target bundleno = 1232 (0x4d0), region = 52  ;;  %v1009_v2 = vpack.c.bf16 (!%p275_p2), %v336_v1, %v335_v0  ;;  %p314_p3 = scmp.lt.s32.totalorder (!%p275_p2), %s902_s11, 7  ;;  %v446_v7 = vld [vmem:[%s1343_s4] sm:$0xff] (!%p275_p2)  ;;  %v447_v8 = vld [vmem:[%s1343_s4 + $0x8] sm:$0xff] (!%p275_p2)  ;;  %v449_v11 = vld [vmem:[%s1343_s4 + $0x18] sm:$0xff] (!%p275_p2)  ;;  %vm675_vm2 = vcmask (!%p275_p2), 64512  }
   0x7   : > { %v1013_v9 = vpack.c.bf16 (!%p275_p2), %v447_v8, %v446_v7  ;;  %v1017_v12 = vpack.c.bf16 (!%p275_p2), %v449_v11, %v448_v10  ;;  %v450_v13 = vld [vmem:[%s1343_s4 + $0x20] sm:$0xff] (!%p275_p2)  ;;  %v451_v14 = vld [vmem:[%s1343_s4 + $0x28] sm:$0xff] (!%p275_p2)  ;;  %v452_v16 = vld [vmem:[%s1343_s4 + $0x30] sm:$0xff] (!%p275_p2) }
   0x8   : > { %1010 = vmatprep.subr.bf16.mxu0 (!%p275_p2), %v1009_v2  ;;  %v1021_v15 = vpack.c.bf16 (!%p275_p2), %v451_v14, %v450_v13  ;;  %v453_v17 = vld [vmem:[%s1343_s4 + $0x38] sm:$0xff] (!%p275_p2)  ;;  %v908_v19 = vld [vmem:[%s1342_s3] ss:$0 sm:$0xff] (!%p275_p2)  ;;  %v564_v33 = vld [vmem:[%s1345_s6 + $0x8] sm:$0xff] (!%p275_p2) }
   0x9   : > { %1012 = vmatpush3.bf16.msra.mxu0 (!%p275_p2), %v1009_v2  ;;  %1014 = vmatprep.subr.bf16.mxu1 (!%p275_p2), %v1013_v9  ;;  %v1025_v18 = vpack.c.bf16 (!%p275_p2), %v453_v17, %v452_v16  ;;  %v563_v32 = vld [vmem:[%s1345_s6] sm:$0xff] (!%p275_p2)  ;;  %v565_v35 = vld [vmem:[%s1345_s6 + $0x10] sm:$0xff] (!%p275_p2)  ;;  %v566_v36 = vld [vmem:[%s1345_s6 + $0x18] sm:$0xff] (!%p275_p2) }
   0xa   : > { %1016 = vmatpush3.bf16.msra.mxu1 (!%p275_p2), %v1013_v9  ;;  %v1029_v34 = vpack.c.bf16 (!%p275_p2), %v564_v33, %v563_v32  ;;  %v1033_v37 = vpack.c.bf16 (!%p275_p2), %v566_v36, %v565_v35  ;;  %v567_v38 = vld [vmem:[%s1345_s6 + $0x20] sm:$0xff] (!%p275_p2)  ;;  %v568_v39 = vld [vmem:[%s1345_s6 + $0x28] sm:$0xff] (!%p275_p2)  ;;  %v569_v41 = vld [vmem:[%s1345_s6 + $0x30] sm:$0xff] (!%p275_p2) }
   0xb   : > { %1018 = vmatprep.subr.bf16.mxu1 (!%p275_p2), %v1017_v12  ;;  %v1037_v40 = vpack.c.bf16 (!%p275_p2), %v568_v39, %v567_v38  ;;  %v570_v42 = vld [vmem:[%s1345_s6 + $0x38] sm:$0xff] (!%p275_p2)  ;;  %v913_v44 = vld [vmem:[%s1344_s5] ss:$0 sm:$0xff] (!%p275_p2) }
   0xc   : > { %1030 = vmatprep.subr.bf16.mxu0 (!%p275_p2), %v1029_v34  ;;  %v1041_v43 = vpack.c.bf16 (!%p275_p2), %v570_v42, %v569_v41  ;;  %v918_v57 = vld [vmem:[%s1346_s7] ss:$0 sm:$0xff] (!%p275_p2) }
   0xd   : > { %s1349_s11 = smov (!%p314_p3, %s902_s11), 7 }
   0xe   : > { %s1168_s12 = sshll.u32 %s1349_s11, 3  ;;  %1020 = vmatpush3.bf16.msra.mxu1 %v1017_v12 }
   0xf   : > { %s317_s15 = scalar_lea.vmem %s1339_s0, %s1168_s12  ;;  %1022 = vmatprep.subr.bf16.mxu1 %v1021_v15  ;;  %s323_s16 = scalar_lea.vmem %s1340_s1, %s1168_s12 }
  0x10   : > { %v331_v3 = vld [vmem:[%s317_s15] sm:$0xff]  ;;  %v332_v4 = vld [vmem:[%s317_s15 + $0x8] sm:$0xff]  ;;  %v333_v5 = vld [vmem:[%s317_s15 + $0x10] sm:$0xff]  ;;  %s329_s19 = scalar_lea.vmem %s1347_s8, %s1168_s12 }
  0x11   : > { %959 = vmatprep.mubr.msk.f32.mxu0 %vm344_vm0, %v331_v3  ;;  %v334_v6 = vld [vmem:[%s317_s15 + $0x18] sm:$0xff] }
  0x12   : > { %960 = vmatmul.mubr.msk.f32.vlgmr.msra.gmra.mrb[0].mxu0 %vm344_vm0, %v332_v4  ;;  %1024 = vmatpush3.bf16.msra.mxu1 %v1021_v15 }
  0x13   : > { %962 = vmatprep.mubr.msk.f32.mxu0 %vm344_vm0, %v333_v5  ;;  %1026 = vmatprep.subr.bf16.mxu1 %v1025_v18 }
  0x14   : > { %1032 = vmatpush3.bf16.msra.mxu0 %v1029_v34 }
  0x15   : > { %1034 = vmatprep.subr.bf16.mxu0 %v1033_v37 }
  0x16   : > { %963 = vmatmul.mubr.msk.f32.gmra.mrb[2].mxu0 %vm344_vm0, %v334_v6  ;;  %1028 = vmatpush3.bf16.msra.mxu1 %v1025_v18  ;;  %v1107_v6 = vmov 0  }
  0x17   : > { %1056 = vset.pattern.permute.xlu1 %v1107_v6  ;;  %1055 = vset.pattern.permute.xlu0 %v1107_v6 }
  0x18   : > { %1036 = vmatpush3.bf16.msra.mxu0 %v1033_v37  ;;  %v736_v37 = vlaneseq }
  0x19   : > { %1038 = vmatprep.subr.bf16.mxu0 %v1037_v40 }
  0x1c   : > { %1040 = vmatpush3.bf16.msra.mxu0 %v1037_v40 }
  0x1d   : > { %1042 = vmatprep.subr.bf16.mxu0 %v1041_v43 }
  0x20   : > { %1044 = vmatpush3.bf16.msra.mxu0 %v1041_v43  ;;  %v1279_v43 = vand.u32 127, %v736_v37 }
  0x22   : > { %vm791_vm7 = vcmp.eq.s32.totalorder %v1279_v43, 1  ;;  %vm792_vm8 = vcmp.eq.s32.totalorder %v1279_v43, 2  ;;  %vm790_vm9 = vcmp.eq.s32.totalorder %v1279_v43, 0 }
  0xe5   : > { %v961_v20 = vpop.f32.mrb[0].mxu0 }
  0xe6   : > { %v429_v21 = vadd.f32 %v961_v20, %v908_v19  ;;  %v423_v22 = vpop.f32.mrb[1].mxu0 }
  0xe7   : > { %v424_v23 = vadd.f32 %v908_v19, %v423_v22 }
  0xe9   : > { %1059 = vtanh.f32 %v424_v23  ;;  %v964_v24 = vpop.f32.mrb[2].mxu0 }
  0xea   : > { %1061 = vtanh.f32 %v429_v21  ;;  %v439_v25 = vadd.f32 %v964_v24, %v908_v19  ;;  %v433_v26 = vpop.f32.mrb[3].mxu0 }
  0xeb   : > { %v434_v27 = vadd.f32 %v908_v19, %v433_v26 }
  0xec   : > { %1063 = vtanh.f32 %v439_v25 }
  0xed   : > { %1065 = vtanh.f32 %v434_v27  ;;  %v733_v27 = vld [vmem:[%s323_s16 + $0x8] sm:$0xff] }
  0xf3   : > { %v1060_v28 = vpop.eup %1059 }
  0xf4   : > { %v1062_v29 = vpop.eup %1061  ;;  %981 = vmatprep.mubr.msk.f32.mxu1 %vm461_vm1, %v1060_v28  ;;  %v732_v28 = vld [vmem:[%s323_s16] sm:$0xff] }
  0xf5   : > { %982 = vmatmul.mubr.msk.f32.vlgmr.msra.gmra.mrb[0].mxu1 %vm461_vm1, %v1062_v29  ;;  %v734_v29 = vld [vmem:[%s323_s16 + $0x10] sm:$0xff] }
  0xf6   : > { %v1064_v30 = vpop.eup %1063 }
  0xf7   : > { %v1066_v31 = vpop.eup %1065 }
  0xf8   : > { %984 = vmatprep.mubr.msk.f32.mxu1 %vm461_vm1, %v1066_v31  ;;  %v1108_v31 = vmov 8  }
  0xf9   : > { %985 = vmatmul.mubr.msk.f32.gmra.mrb[2].mxu1 %vm461_vm1, %v1064_v30  ;;  %v735_v30 = vld [vmem:[%s323_s16 + $0x18] sm:$0xff] }
 0x1c8   : > { %v983_v45 = vpop.f32.mrb[0].mxu1 }
 0x1c9   : > { %v546_v46 = vadd.f32 %v983_v45, %v913_v44  ;;  %v540_v47 = vpop.f32.mrb[1].mxu1 }
 0x1ca   : > { %v541_v48 = vadd.f32 %v913_v44, %v540_v47 }
 0x1cc   : > { %1067 = vtanh.f32 %v541_v48  ;;  %v986_v49 = vpop.f32.mrb[2].mxu1 }
 0x1cd   : > { %1069 = vtanh.f32 %v546_v46  ;;  %v556_v50 = vadd.f32 %v986_v49, %v913_v44  ;;  %v550_v51 = vpop.f32.mrb[3].mxu1 }
 0x1ce   : > { %v551_v52 = vadd.f32 %v913_v44, %v550_v51 }
 0x1cf   : > { %1071 = vtanh.f32 %v556_v50 }
 0x1d0   : > { %1073 = vtanh.f32 %v551_v52 }
 0x1d6   : > { %v1068_v53 = vpop.eup %1067 }
 0x1d7   : > { %v1070_v54 = vpop.eup %1069  ;;  %1003 = vmatprep.mubr.msk.f32.mxu0 %vm461_vm1, %v1068_v53 }
 0x1d8   : > { %1004 = vmatmul.mubr.msk.f32.vlgmr.msra.gmra.mrb[4].mxu0 %vm461_vm1, %v1070_v54 }
 0x1d9   : > { %v1072_v55 = vpop.eup %1071 }
 0x1da   : > { %v1074_v56 = vpop.eup %1073 }
 0x1db   : > { %1006 = vmatprep.mubr.msk.f32.mxu0 %vm461_vm1, %v1074_v56 }
 0x1dc   : > { %1007 = vmatmul.mubr.msk.f32.gmra.mrb[6].mxu0 %vm461_vm1, %v1072_v55 }
 0x2ab   : > { %v1005_v58 = vpop.f32.mrb[4].mxu0 }
 0x2ac   : > { %v656_v59 = vpop.f32.mrb[5].mxu0  ;;  %v1241_v61 = vadd.f32 %v1005_v58, %v918_v57 }
 0x2ad   : > { %v1239_v60 = vadd.f32 %v918_v57, %v656_v59 }
 0x2ae   : > { %v679_v4 = vsel %vm675_vm2, %v1241_v61, -inf }
 0x2af   : > { %v1008_v62 = vpop.f32.mrb[6].mxu0  ;;  %v676_v63 = vsel %vm675_vm2, %v1239_v60, -inf }
 0x2b0   : > { %v666_v0 = vpop.f32.mrb[7].mxu0  ;;  %677 = vmax.xlane.f32.xlu0 %v676_v63  ;;  %v1247_v2 = vadd.f32 %v1008_v62, %v918_v57 }
 0x2b1   : > { %v1245_v1 = vadd.f32 %v918_v57, %v666_v0 }
 0x2b2   : > { %v685_v5 = vsel %vm675_vm2, %v1247_v2, -inf }
 0x2b3   : > { %v682_v3 = vsel %vm675_vm2, %v1245_v1, -inf }
 0x2b4   : > { %683 = vmax.xlane.f32.xlu1 %v682_v3  ;;  %680 = vmax.xlane.f32.xlu0 %v679_v4 }
 0x2b8   : > { %686 = vmax.xlane.f32.xlu1 %v685_v5 }
 0x33d   : > { %v678_v7 = vpop.xlane.xlu0 %677 }
 0x33e   : > { %v1256_v8 = vsub.f32 %v1239_v60, %v678_v7 }
 0x340   : > { %v692_v9 = vmul.f32 1.442695, %v1256_v8 }
 0x341   : > { %v684_v10 = vpop.xlane.xlu1 %683  ;;  %v681_v11 = vpop.xlane.xlu0 %680 }
 0x342   : > { %1075 = vpow2.f32 %v692_v9  ;;  %v690_v12 = vsub.f32 %v1245_v1, %v684_v10  ;;  %v689_v13 = vsub.f32 %v1241_v61, %v681_v11 }
 0x344   : > { %v696_v14 = vmul.f32 1.442695, %v690_v12  ;;  %v694_v15 = vmul.f32 1.442695, %v689_v13 }
 0x345   : > { %v687_v16 = vpop.xlane.xlu1 %686 }
 0x346   : > { %1077 = vpow2.f32 %v696_v14  ;;  %v1262_v17 = vsub.f32 %v1247_v2, %v687_v16 }
 0x347   : > { %1079 = vpow2.f32 %v694_v15 }
 0x348   : > { %v698_v18 = vmul.f32 1.442695, %v1262_v17 }
 0x34a   : > { %1081 = vpow2.f32 %v698_v18 }
 0x34c   : > { %v1265_v19 = vpop.eup %1075 }
 0x34d   : > { %v700_v20 = vsel %vm675_vm2, %v1265_v19, 0.0 }
 0x34e   : > { %701 = vadd.xlane.f32.xlu0 %v700_v20 }
 0x350   : > { %v1078_v21 = vpop.eup %1077 }
 0x351   : > { %v1080_v22 = vpop.eup %1079  ;;  %v706_v23 = vsel %vm675_vm2, %v1078_v21, 0.0 }
 0x352   : > { %707 = vadd.xlane.f32.xlu0 %v706_v23  ;;  %v703_v24 = vsel %vm675_vm2, %v1080_v22, 0.0 }
 0x353   : > { %704 = vadd.xlane.f32.xlu1 %v703_v24 }
 0x354   : > { %v1271_v25 = vpop.eup %1081 }
 0x355   : > { %v709_v26 = vsel %vm675_vm2, %v1271_v25, 0.0 }
 0x357   : > { %710 = vadd.xlane.f32.xlu1 %v709_v26 }
 0x368   : > { %742 = vperm.xlu1 %1056, %v733_v27   ;;  %739 = vperm.xlu0 %1055, %v732_v28  }
 0x36c   : > { %745 = vperm.xlu1 %1056, %v734_v29   ;;  %1057 = vset.pattern.permute.xlu0 %v1108_v31 }
 0x370   : > { %748 = vperm.xlu1 %1056, %v735_v30  }
 0x374   : > { %1058 = vset.pattern.permute.xlu1 %v1108_v31 }
 0x3db   : > { %v702_v32 = vpop.xlane.xlu0 %701 }
 0x3dc   : > { %1083 = vlog2.f32 %v702_v32 }
 0x3df   : > { %v708_v33 = vpop.xlane.xlu0 %707 }
 0x3e0   : > { %v705_v34 = vpop.xlane.xlu1 %704  ;;  %1085 = vlog2.f32 %v708_v33 }
 0x3e1   : > { %1087 = vlog2.f32 %v705_v34 }
 0x3e2   : > { %1089 = vrcp.f32 %v705_v34 }
 0x3e3   : > { %1091 = vrcp.f32 %v708_v33 }
 0x3e4   : > { %v711_v35 = vpop.xlane.xlu1 %710 }
 0x3e5   : > { %1093 = vlog2.f32 %v711_v35 }
 0x3e6   : > { %1095 = vrcp.f32 %v702_v32  ;;  %v1084_v36 = vpop.eup %1083 }
 0x3e7   : > { %v713_v40 = vmul.f32 0.6931472, %v1084_v36  ;;  %v740_v46 = vpop.permute.xlu0 %739  ;;  %1097 = vrcp.f32 %v711_v35 }
 0x3e8   : > { %v743_v38 = vpop.permute.xlu1 %742  ;;  %vm750_vm4 = vcmp.eq.s32.totalorder %v1279_v43, %v740_v46 }
 0x3e9   : > { %vm751_vm3 = vcmp.eq.s32.totalorder %v1279_v43, %v743_v38  ;;  %v720_v51 = vsub.f32 %v1256_v8, %v713_v40 }
 0x3ea   : > { %v1086_v39 = vpop.eup %1085 }
 0x3eb   : > { %v1088_v41 = vpop.eup %1087  ;;  %v717_v42 = vmul.f32 0.6931472, %v1086_v39  ;;  %v754_v0 = vsel %vm750_vm4, %v720_v51, 0.0 }
 0x3ec   : > { %v1090_v44 = vpop.eup %1089  ;;  %v715_v45 = vmul.f32 0.6931472, %v1088_v41  ;;  %v746_v53 = vpop.permute.xlu1 %745  ;;  %v758_v5 = vsel %vm675_vm2, %v754_v0, 0.0 }
 0x3ed   : > { %v1092_v47 = vpop.eup %1091  ;;  %v722_v48 = vsub.f32 %v690_v12, %v717_v42  ;;  %v729_v50 = vmul.f32 %v1090_v44, %v1080_v22  ;;  %vm752_vm5 = vcmp.eq.s32.totalorder %v1279_v43, %v746_v53 }
 0x3ee   : > { %v721_v49 = vsub.f32 %v689_v13, %v715_v45  ;;  %v730_v54 = vmul.f32 %v1092_v47, %v1078_v21 }
 0x3ef   : > { %v1094_v52 = vpop.eup %1093  ;;  %v756_v3 = vsel %vm752_vm5, %v722_v48, 0.0 }
 0x3f0   : > { %v1096_v55 = vpop.eup %1095  ;;  %v755_v56 = vsel %vm751_vm3, %v721_v49, 0.0  ;;  %v771_v57 = vmul.f32 %v729_v50, %v721_v49  ;;  %v772_v59 = vmul.f32 %v730_v54, %v722_v48  ;;  %v719_v62 = vmul.f32 0.6931472, %v1094_v52  ;;  %v749_v7 = vpop.permute.xlu1 %748 }
 0x3f1   : > { %v761_v58 = vsel %vm675_vm2, %v755_v56, 0.0  ;;  %v728_v4 = vmul.f32 %v1096_v55, %v1265_v19  ;;  %v764_v8 = vsel %vm675_vm2, %v756_v3, 0.0  ;;  %v1098_v10 = vpop.eup %1097  ;;  %vm753_vm6 = vcmp.eq.s32.totalorder %v1279_v43, %v749_v7 }
 0x3f2   : > { %762 = vadd.xlane.f32.xlu1 %v761_v58  ;;  %v777_v63 = vsel %vm675_vm2, %v771_v57, 0.0  ;;  %v723_v9 = vsub.f32 %v1262_v17, %v719_v62  ;;  %v731_v13 = vmul.f32 %v1098_v10, %v1271_v25  ;;  %v780_v17 = vsel %vm675_vm2, %v772_v59, 0.0 }
 0x3f3   : > { %778 = vadd.xlane.f32.xlu0 %v777_v63  ;;  %v770_v6 = vmul.f32 %v728_v4, %v720_v51 }
 0x3f4   : > { %v757_v12 = vsel %vm753_vm6, %v723_v9, 0.0  ;;  %v773_v15 = vmul.f32 %v731_v13, %v723_v9 }
 0x3f5   : > { %v774_v11 = vsel %vm675_vm2, %v770_v6, 0.0  ;;  %v767_v14 = vsel %vm675_vm2, %v757_v12, 0.0 }
 0x3f6   : > { %759 = vadd.xlane.f32.xlu1 %v758_v5  ;;  %v783_v16 = vsel %vm675_vm2, %v773_v15, 0.0 }
 0x3f7   : > { %765 = vadd.xlane.f32.xlu0 %v764_v8 }
 0x3fa   : > { %775 = vadd.xlane.f32.xlu1 %v774_v11 }
 0x3fe   : > { %768 = vadd.xlane.f32.xlu1 %v767_v14 }
 0x402   : > { %784 = vadd.xlane.f32.xlu1 %v783_v16 }
 0x40d   : > { %799 = vperm.xlu0 %1057, %v1239_v60  }
 0x413   : > { %804 = vperm.xlu1 %1058, %v1241_v61  }
 0x417   : > { %809 = vperm.xlu1 %1058, %v1245_v1  }
 0x43b   : > { %781 = vadd.xlane.f32.xlu1 %v780_v17 }
 0x44c   : > { %814 = vperm.xlu1 %1058, %v1247_v2  }
 0x47f   : > { %v763_v18 = vpop.xlane.xlu1 %762 }
 0x480   : > { %v779_v19 = vpop.xlane.xlu0 %778 }
 0x481   : > { %v787_v25 = vsub.f32 0.0, %v779_v19 }
 0x483   : > { %v760_v20 = vpop.xlane.xlu1 %759  ;;  %v794_v27 = vsel %vm792_vm8, %v787_v25, 0.0 }
 0x484   : > { %v766_v22 = vpop.xlane.xlu0 %765 }
 0x487   : > { %v776_v21 = vpop.xlane.xlu1 %775 }
 0x488   : > { %v786_v23 = vsub.f32 0.0, %v776_v21 }
 0x48a   : > { %v793_v61 = vsel %vm792_vm8, %v786_v23, 0.0 }
 0x48b   : > { %v769_v60 = vpop.xlane.xlu1 %768 }
 0x48c   : > { %v800_v1 = vpop.permute.xlu0 %799 }
 0x48d   : > { %v817_v2 = vsel %vm791_vm7, %v800_v1, %v793_v61 }
 0x48e   : > { %v821_v24 = vsel %vm790_vm9, %v760_v20, %v817_v2 }
 0x48f   : > { %825 = vst.msk [vmem:[%s329_s19] sm:$0xff] %vm675_vm2, %v821_v24  ;;  %v785_v26 = vpop.xlane.xlu1 %784 }
 0x490   : > { %v789_v32 = vsub.f32 0.0, %v785_v26 }
 0x492   : > { %v796_v36 = vsel %vm792_vm8, %v789_v32, 0.0 }
 0x493   : > { %v805_v28 = vpop.permute.xlu1 %804 }
 0x494   : > { %v818_v29 = vsel %vm791_vm7, %v805_v28, %v794_v27 }
 0x495   : > { %v822_v30 = vsel %vm790_vm9, %v763_v18, %v818_v29 }
 0x496   : > { %826 = vst.msk [vmem:[%s329_s19 + $0x8] sm:$0xff] %vm675_vm2, %v822_v30 }
 0x497   : > { %v810_v31 = vpop.permute.xlu1 %809 }
 0x4c8   : > { %v782_v33 = vpop.xlane.xlu1 %781 }
 0x4c9   : > { %v788_v34 = vsub.f32 0.0, %v782_v33 }
 0x4cb   : > { %v795_v35 = vsel %vm792_vm8, %v788_v34, 0.0 }
 0x4cc   : > { %v819_v37 = vsel %vm791_vm7, %v810_v31, %v795_v35  ;;  %v815_v38 = vpop.permute.xlu1 %814 }
 0x4cd   : > { %v823_v39 = vsel %vm790_vm9, %v766_v22, %v819_v37  ;;  %v820_v40 = vsel %vm791_vm7, %v815_v38, %v796_v36 }
 0x4ce   : > { %827 = vst.msk [vmem:[%s329_s19 + $0x10] sm:$0xff] %vm675_vm2, %v823_v39  ;;  %v824_v41 = vsel %vm790_vm9, %v769_v60, %v820_v40 }
 0x4cf   : > { %828 = vst.msk [vmem:[%s329_s19 + $0x18] sm:$0xff] %vm675_vm2, %v824_v41 }
 0x4d0 PF: > { %s18_s27 = sadd.s32 1, %s1105_s27  }
 0x4d1   : > { %p15_p4 = scmp.ge.s32.totalorder %s18_s27, 4  }
 0x4d3   :  { %17 = sbr.rel (!%p15_p4) target bundleno = 1 (0x1), region = 85 }

</bundles_post_ra>
